<compile_context>
chip_gen: v7x
topology: tpu7x:2x2x1
jax: 0.10.0
libtpu: 0.0.40
codegen_flags: <defaults>
</compile_context>

<pallas_src>
import jax
import jax.numpy as jnp
from jax import lax
from jax.experimental import pallas as pl
from jax.experimental.pallas import tpu as pltpu


# -----------------------------------------------------------------------------
# Kernel: the whole sequence in one invocation
# -----------------------------------------------------------------------------
def _lstm_fused_kernel(x_ref,      # (S, Bp, I)   full input sequence
                       wih_ref,    # (I, 4H)      W_ih^T   (matmul dtype)
                       whh_ref,    # (H, 4H)      W_hh^T   (matmul dtype)
                       b_ref,      # (1, 4H)      b_ih + b_hh (f32)
                       wfc_ref,    # (H, O)       Linear weight^T (matmul dtype)
                       bfc_ref,    # (1, O)       Linear bias (f32)
                       out_ref,    # (S*Bp, O)    projected outputs
                       hs_ref):    # (S*Bp, H)    VMEM scratch: all hidden states
    S, Bp, _ = x_ref.shape
    H = whh_ref.shape[0]
    mm_dtype = wih_ref.dtype

    # ---- hoisted loop invariants (JAX does not CSE broadcast_in_dim) -------
    w_ih = wih_ref[...]
    w_hh = whh_ref[...]
    bias = jnp.broadcast_to(b_ref[...], (Bp, 4 * H)).astype(jnp.float32)

    # sigmoid(x) = 0.5 * tanh(0.5 * x) + 0.5  ->  a single full-tile EUP tanh
    # per step; a lane mask picks plain tanh for the cell gate (g).
    lane = lax.broadcasted_iota(jnp.int32, (Bp, 4 * H), 1)
    is_cell = jnp.logical_and(lane >= 2 * H, lane < 3 * H)
    pre_scale = jnp.where(is_cell, 1.0, 0.5).astype(jnp.float32)
    post_mul = pre_scale
    post_add = jnp.where(is_cell, 0.0, 0.5).astype(jnp.float32)

    h0 = jnp.zeros((Bp, H), jnp.float32)
    c0 = jnp.zeros((Bp, H), jnp.float32)

    def step(t, carry):
        h, c = carry
        x_t = x_ref[t]                                            # (Bp, I)
        gates = (jnp.dot(x_t.astype(mm_dtype), w_ih,
                         preferred_element_type=jnp.float32)
                 + jnp.dot(h.astype(mm_dtype), w_hh,
                           preferred_element_type=jnp.float32)
                 + bias)                                          # (Bp, 4H) f32
        act = jnp.tanh(gates * pre_scale) * post_mul + post_add
        # PyTorch gate order: input, forget, cell(g), output
        i_g = act[:, 0 * H:1 * H]
        f_g = act[:, 1 * H:2 * H]
        g_g = act[:, 2 * H:3 * H]
        o_g = act[:, 3 * H:4 * H]
        c_new = f_g * c + i_g * g_g
        h_new = o_g * jnp.tanh(c_new)
        # Stash the hidden state; the FC happens once for all timesteps later.
        hs_ref[pl.ds(t * Bp, Bp), :] = h_new
        return (h_new, c_new)

    lax.fori_loop(0, S, step, (h0, c0), unroll=True)

    # ---- batched output projection: one (S*Bp, H) @ (H, O) matmul,
    #      written back as a single slab (lane-dense single store/DMA) --------
    y = (jnp.dot(hs_ref[...].astype(wfc_ref.dtype), wfc_ref[...],
                 preferred_element_type=jnp.float32)
         + bfc_ref[...])
    out_ref[...] = y.astype(out_ref.dtype)


# -----------------------------------------------------------------------------
# Wrapper
# -----------------------------------------------------------------------------
def lstm_rnn_forward(x, params, *, use_bf16_matmul=False):
    """x: (S, B, I) float32 -> (S, B, O) float32.  Matches LstmRNN.forward."""
    S, B, I = x.shape
    w_ih_t = params["w_ih_t"]           # (I, 4H)
    w_hh_t = params["w_hh_t"]           # (H, 4H)
    b = params["b"]                     # (1, 4H)
    w_fc_t = params["w_fc_t"]           # (H, O)
    b_fc = params["b_fc"]               # (1, O)
    H = w_hh_t.shape[0]
    O = w_fc_t.shape[1]

    # Pad batch to a sublane multiple (8) so every (B, .) tile is dense; the
    # padded rows are independent of the real ones and get sliced off below.
    Bp = max(8, ((B + 7) // 8) * 8)
    if Bp != B:
        x = jnp.pad(x, ((0, 0), (0, Bp - B), (0, 0)))

    # bf16 weights (v6e/v7x): halves weight VMEM/DMA, doubles MXU throughput at
    # real hidden sizes; accumulation, gate math and h/c state stay f32
    # (v5e-safe).  Default stays f32 so numerics match the f32 reference.
    mm_dtype = jnp.bfloat16 if use_bf16_matmul else jnp.float32
    x = x.astype(mm_dtype)
    w_ih_t = w_ih_t.astype(mm_dtype)
    w_hh_t = w_hh_t.astype(mm_dtype)
    w_fc_t = w_fc_t.astype(mm_dtype)

    grid_spec = pltpu.PrefetchScalarGridSpec(
        num_scalar_prefetch=0,
        grid=(1,),   # single invocation: the whole recurrence runs in-kernel
        in_specs=[
            pl.BlockSpec((S, Bp, I), lambda i: (0, 0, 0)),   # full x sequence
            pl.BlockSpec((I, 4 * H), lambda i: (0, 0)),      # W_ih^T (resident)
            pl.BlockSpec((H, 4 * H), lambda i: (0, 0)),      # W_hh^T (resident)
            pl.BlockSpec((1, 4 * H), lambda i: (0, 0)),      # fused bias
            pl.BlockSpec((H, O), lambda i: (0, 0)),          # Linear W^T
            pl.BlockSpec((1, O), lambda i: (0, 0)),          # Linear bias
        ],
        out_specs=pl.BlockSpec((S * Bp, O), lambda i: (0, 0)),
        scratch_shapes=[
            pltpu.VMEM((S * Bp, H), jnp.float32),            # all hidden states
        ],
    )

    y_flat = pl.pallas_call(
        _lstm_fused_kernel,
        out_shape=jax.ShapeDtypeStruct((S * Bp, O), jnp.float32),
        grid_spec=grid_spec,
        compiler_params=pltpu.CompilerParams(
            dimension_semantics=("arbitrary",),
        ),
    )(x, w_ih_t, w_hh_t, b, w_fc_t, b_fc)

    # (S*Bp, O) rows are time-major, matching PyTorch's x.view(s*b, h).
    return y_flat.reshape(S, Bp, O)[:, :B, :]


# -----------------------------------------------------------------------------
# Pure-JAX reference (for correctness check)
# -----------------------------------------------------------------------------
def lstm_rnn_reference(x, params):
    S, B, I = x.shape
    w_ih_t = params["w_ih_t"]
    w_hh_t = params["w_hh_t"]
    b = params["b"]
    w_fc_t = params["w_fc_t"]
    b_fc = params["b_fc"]
    H = w_hh_t.shape[0]

    def step(carry, x_t):
        h, c = carry
        gates = x_t @ w_ih_t + h @ w_hh_t + b
        i_g = jax.nn.sigmoid(gates[:, 0 * H:1 * H])
        f_g = jax.nn.sigmoid(gates[:, 1 * H:2 * H])
        g_g = jnp.tanh(gates[:, 2 * H:3 * H])
        o_g = jax.nn.sigmoid(gates[:, 3 * H:4 * H])
        c_new = f_g * c + i_g * g_g
        h_new = o_g * jnp.tanh(c_new)
        return (h_new, c_new), h_new

    h0 = jnp.zeros((B, H), jnp.float32)
    c0 = jnp.zeros((B, H), jnp.float32)
    _, hs = lax.scan(step, (h0, c0), x)          # (S, B, H)
    y = hs.reshape(S * B, H) @ w_fc_t + b_fc     # matches x.view(s*b, h) -> Linear
    return y.reshape(S, B, -1)


# -----------------------------------------------------------------------------
# Deterministic parameter init (synthetic; mirrors nn.LSTM / nn.Linear shapes)
# -----------------------------------------------------------------------------
def make_params(key, input_size, hidden_size, output_size):
    ks = jax.random.split(key, 6)
    scale = 1.0 / jnp.sqrt(jnp.float32(hidden_size))
    w_ih = jax.random.uniform(ks[0], (4 * hidden_size, input_size),
                              jnp.float32, -scale, scale)      # nn.LSTM weight_ih_l0
    w_hh = jax.random.uniform(ks[1], (4 * hidden_size, hidden_size),
                              jnp.float32, -scale, scale)      # nn.LSTM weight_hh_l0
    b_ih = jax.random.uniform(ks[2], (4 * hidden_size,), jnp.float32, -scale, scale)
    b_hh = jax.random.uniform(ks[3], (4 * hidden_size,), jnp.float32, -scale, scale)
    w_fc = jax.random.uniform(ks[4], (output_size, hidden_size),
                              jnp.float32, -scale, scale)      # nn.Linear weight
    b_fc = jax.random.uniform(ks[5], (output_size,), jnp.float32, -scale, scale)
    return {
        "w_ih_t": w_ih.T,                         # (I, 4H)
        "w_hh_t": w_hh.T,                         # (H, 4H)
        "b": (b_ih + b_hh)[None, :],              # (1, 4H)
        "w_fc_t": w_fc.T,                         # (H, O)
        "b_fc": b_fc[None, :],                    # (1, O)
    }


if __name__ == "__main__":
    # Small shapes consistent with the module: seq=8, batch=2, input=16,
    # hidden=32, output=4, num_layers=1.
    S, B, I, H, O = 8, 2, 16, 32, 4

    key = jax.random.PRNGKey(0)
    k_x, k_p = jax.random.split(key)
    x = jax.random.normal(k_x, (S, B, I), dtype=jnp.float32)
    params = make_params(k_p, I, H, O)

    out = lstm_rnn_forward(x, params)
    out = jax.block_until_ready(out)

    ref = lstm_rnn_reference(x, params)
    assert out.shape == (S, B, O)
    assert jnp.allclose(out, ref, atol=2e-5, rtol=2e-5), "mismatch vs reference"

    print("KERNEL_OK")
</pallas_src>

<mosaic_0001>
module attributes {stable_mosaic.version = 11 : i64} {
  func.func @_lstm_fused_kernel(%arg0: i32, %arg1: memref<8x8x16xf32, #tpu.memory_space<vmem>>, %arg2: memref<16x128xf32, #tpu.memory_space<vmem>>, %arg3: memref<32x128xf32, #tpu.memory_space<vmem>>, %arg4: memref<1x128xf32, #tpu.memory_space<vmem>>, %arg5: memref<32x4xf32, #tpu.memory_space<vmem>>, %arg6: memref<1x4xf32, #tpu.memory_space<vmem>>, %arg7: memref<64x4xf32, #tpu.memory_space<vmem>>, %arg8: memref<64x32xf32, #tpu.memory_space<vmem>>) attributes {dimension_semantics = [#tpu.dimension_semantics<arbitrary>], iteration_bounds = array<i64: 1>, scalar_prefetch = 0 : i64, scratch_operands = 1 : i64, tpu.core_type = #tpu.core_type<tc>, window_params = [{pipeline_mode = #tpu.pipeline_mode<synchronous>, transform_indices = @transform_0, window_bounds = array<i64: 8, 8, 16>}, {pipeline_mode = #tpu.pipeline_mode<synchronous>, transform_indices = @transform_1, window_bounds = array<i64: 16, 128>}, {pipeline_mode = #tpu.pipeline_mode<synchronous>, transform_indices = @transform_2, window_bounds = array<i64: 32, 128>}, {pipeline_mode = #tpu.pipeline_mode<synchronous>, transform_indices = @transform_3, window_bounds = array<i64: 1, 128>}, {pipeline_mode = #tpu.pipeline_mode<synchronous>, transform_indices = @transform_4, window_bounds = array<i64: 32, 4>}, {pipeline_mode = #tpu.pipeline_mode<synchronous>, transform_indices = @transform_5, window_bounds = array<i64: 1, 4>}, {pipeline_mode = #tpu.pipeline_mode<synchronous>, transform_indices = @transform_6, window_bounds = array<i64: 64, 4>}]} {
    %c0 = arith.constant 0 : index
    %c0_0 = arith.constant 0 : index
    %0 = vector.load %arg2[%c0, %c0_0] : memref<16x128xf32, #tpu.memory_space<vmem>>, vector<16x128xf32>
    %c0_1 = arith.constant 0 : index
    %c0_2 = arith.constant 0 : index
    %1 = vector.load %arg3[%c0_1, %c0_2] : memref<32x128xf32, #tpu.memory_space<vmem>>, vector<32x128xf32>
    %c0_3 = arith.constant 0 : index
    %c0_4 = arith.constant 0 : index
    %2 = vector.load %arg4[%c0_3, %c0_4] : memref<1x128xf32, #tpu.memory_space<vmem>>, vector<1x128xf32>
    %3 = vector.shape_cast %2 : vector<1x128xf32> to vector<1x128xf32>
    %4 = vector.broadcast %3 : vector<1x128xf32> to vector<8x128xf32>
    %5 = tpu.iota {dimensions = array<i32: 1>} : vector<8x128xi32>
    %c64_i32 = arith.constant 64 : i32
    %6 = vector.broadcast %c64_i32 : i32 to vector<8x128xi32>
    %7 = arith.cmpi sge, %5, %6 : vector<8x128xi32>
    %c96_i32 = arith.constant 96 : i32
    %8 = vector.broadcast %c96_i32 : i32 to vector<8x128xi32>
    %9 = arith.cmpi slt, %5, %8 : vector<8x128xi32>
    %10 = arith.andi %7, %9 : vector<8x128xi1>
    %cst = arith.constant 1.000000e+00 : f32
    %cst_5 = arith.constant 5.000000e-01 : f32
    %11 = vector.broadcast %cst : f32 to vector<8x128xf32>
    %12 = vector.broadcast %cst_5 : f32 to vector<8x128xf32>
    %13 = arith.select %10, %11, %12 : vector<8x128xi1>, vector<8x128xf32>
    %cst_6 = arith.constant 0.000000e+00 : f32
    %cst_7 = arith.constant 5.000000e-01 : f32
    %14 = vector.broadcast %cst_6 : f32 to vector<8x128xf32>
    %15 = vector.broadcast %cst_7 : f32 to vector<8x128xf32>
    %16 = arith.select %10, %14, %15 : vector<8x128xi1>, vector<8x128xf32>
    %cst_8 = arith.constant 0.000000e+00 : f32
    %17 = vector.broadcast %cst_8 : f32 to vector<8x32xf32>
    %cst_9 = arith.constant 0.000000e+00 : f32
    %18 = vector.broadcast %cst_9 : f32 to vector<8x32xf32>
    %c0_i32 = arith.constant 0 : i32
    %19 = arith.index_cast %c0_i32 : i32 to index
    %c0_10 = arith.constant 0 : index
    %c0_11 = arith.constant 0 : index
    %20 = vector.load %arg1[%19, %c0_10, %c0_11] : memref<8x8x16xf32, #tpu.memory_space<vmem>>, vector<1x8x16xf32>
    %21 = vector.shape_cast %20 : vector<1x8x16xf32> to vector<8x16xf32>
    %cst_12 = arith.constant dense<0.000000e+00> : vector<8x128xf32>
    %22 = tpu.matmul %21, %0, %cst_12 {dimension_numbers = #tpu.dot_dimension_numbers<[1], [0], [0], [1], [0, 0, 1, 1], [], []>} : vector<8x16xf32>, vector<16x128xf32>, vector<8x128xf32> -> vector<8x128xf32>
    %cst_13 = arith.constant dense<0.000000e+00> : vector<8x128xf32>
    %23 = tpu.matmul %17, %1, %cst_13 {dimension_numbers = #tpu.dot_dimension_numbers<[1], [0], [0], [1], [0, 0, 1, 1], [], []>} : vector<8x32xf32>, vector<32x128xf32>, vector<8x128xf32> -> vector<8x128xf32>
    %24 = arith.addf %22, %23 : vector<8x128xf32>
    %25 = arith.addf %24, %4 : vector<8x128xf32>
    %26 = arith.mulf %25, %13 : vector<8x128xf32>
    %27 = math.tanh %26 : vector<8x128xf32>
    %28 = arith.mulf %27, %13 : vector<8x128xf32>
    %29 = arith.addf %28, %16 : vector<8x128xf32>
    %30 = vector.extract_strided_slice %29 {offsets = [0, 0], sizes = [8, 32], strides = [1, 1]} : vector<8x128xf32> to vector<8x32xf32>
    %31 = vector.extract_strided_slice %29 {offsets = [0, 32], sizes = [8, 32], strides = [1, 1]} : vector<8x128xf32> to vector<8x32xf32>
    %32 = vector.extract_strided_slice %29 {offsets = [0, 64], sizes = [8, 32], strides = [1, 1]} : vector<8x128xf32> to vector<8x32xf32>
    %33 = vector.extract_strided_slice %29 {offsets = [0, 96], sizes = [8, 32], strides = [1, 1]} : vector<8x128xf32> to vector<8x32xf32>
    %34 = arith.mulf %31, %18 : vector<8x32xf32>
    %35 = arith.mulf %30, %32 : vector<8x32xf32>
    %36 = arith.addf %34, %35 : vector<8x32xf32>
    %37 = math.tanh %36 : vector<8x32xf32>
    %38 = arith.mulf %33, %37 : vector<8x32xf32>
    %c8_i32 = arith.constant 8 : i32
    %39 = arith.muli %c0_i32, %c8_i32 : i32
    %40 = arith.index_cast %39 : i32 to index
    %c0_14 = arith.constant 0 : index
    %41 = vector.load %arg8[%40, %c0_14] : memref<64x32xf32, #tpu.memory_space<vmem>>, vector<8x32xf32>
    tpu.vector_store %arg8[%40, %c0_14], %38 {strides = array<i32>} : memref<64x32xf32, #tpu.memory_space<vmem>>, vector<8x32xf32>,
    %c1_i32 = arith.constant 1 : i32
    %42 = arith.index_cast %c1_i32 : i32 to index
    %c0_15 = arith.constant 0 : index
    %c0_16 = arith.constant 0 : index
    %43 = vector.load %arg1[%42, %c0_15, %c0_16] : memref<8x8x16xf32, #tpu.memory_space<vmem>>, vector<1x8x16xf32>
    %44 = vector.shape_cast %43 : vector<1x8x16xf32> to vector<8x16xf32>
    %cst_17 = arith.constant dense<0.000000e+00> : vector<8x128xf32>
    %45 = tpu.matmul %44, %0, %cst_17 {dimension_numbers = #tpu.dot_dimension_numbers<[1], [0], [0], [1], [0, 0, 1, 1], [], []>} : vector<8x16xf32>, vector<16x128xf32>, vector<8x128xf32> -> vector<8x128xf32>
    %cst_18 = arith.constant dense<0.000000e+00> : vector<8x128xf32>
    %46 = tpu.matmul %38, %1, %cst_18 {dimension_numbers = #tpu.dot_dimension_numbers<[1], [0], [0], [1], [0, 0, 1, 1], [], []>} : vector<8x32xf32>, vector<32x128xf32>, vector<8x128xf32> -> vector<8x128xf32>
    %47 = arith.addf %45, %46 : vector<8x128xf32>
    %48 = arith.addf %47, %4 : vector<8x128xf32>
    %49 = arith.mulf %48, %13 : vector<8x128xf32>
    %50 = math.tanh %49 : vector<8x128xf32>
    %51 = arith.mulf %50, %13 : vector<8x128xf32>
    %52 = arith.addf %51, %16 : vector<8x128xf32>
    %53 = vector.extract_strided_slice %52 {offsets = [0, 0], sizes = [8, 32], strides = [1, 1]} : vector<8x128xf32> to vector<8x32xf32>
    %54 = vector.extract_strided_slice %52 {offsets = [0, 32], sizes = [8, 32], strides = [1, 1]} : vector<8x128xf32> to vector<8x32xf32>
    %55 = vector.extract_strided_slice %52 {offsets = [0, 64], sizes = [8, 32], strides = [1, 1]} : vector<8x128xf32> to vector<8x32xf32>
    %56 = vector.extract_strided_slice %52 {offsets = [0, 96], sizes = [8, 32], strides = [1, 1]} : vector<8x128xf32> to vector<8x32xf32>
    %57 = arith.mulf %54, %36 : vector<8x32xf32>
    %58 = arith.mulf %53, %55 : vector<8x32xf32>
    %59 = arith.addf %57, %58 : vector<8x32xf32>
    %60 = math.tanh %59 : vector<8x32xf32>
    %61 = arith.mulf %56, %60 : vector<8x32xf32>
    %c8_i32_19 = arith.constant 8 : i32
    %62 = arith.muli %c1_i32, %c8_i32_19 : i32
    %63 = arith.index_cast %62 : i32 to index
    %c0_20 = arith.constant 0 : index
    %64 = vector.load %arg8[%63, %c0_20] : memref<64x32xf32, #tpu.memory_space<vmem>>, vector<8x32xf32>
    tpu.vector_store %arg8[%63, %c0_20], %61 {strides = array<i32>} : memref<64x32xf32, #tpu.memory_space<vmem>>, vector<8x32xf32>,
    %c2_i32 = arith.constant 2 : i32
    %65 = arith.index_cast %c2_i32 : i32 to index
    %c0_21 = arith.constant 0 : index
    %c0_22 = arith.constant 0 : index
    %66 = vector.load %arg1[%65, %c0_21, %c0_22] : memref<8x8x16xf32, #tpu.memory_space<vmem>>, vector<1x8x16xf32>
    %67 = vector.shape_cast %66 : vector<1x8x16xf32> to vector<8x16xf32>
    %cst_23 = arith.constant dense<0.000000e+00> : vector<8x128xf32>
    %68 = tpu.matmul %67, %0, %cst_23 {dimension_numbers = #tpu.dot_dimension_numbers<[1], [0], [0], [1], [0, 0, 1, 1], [], []>} : vector<8x16xf32>, vector<16x128xf32>, vector<8x128xf32> -> vector<8x128xf32>
    %cst_24 = arith.constant dense<0.000000e+00> : vector<8x128xf32>
    %69 = tpu.matmul %61, %1, %cst_24 {dimension_numbers = #tpu.dot_dimension_numbers<[1], [0], [0], [1], [0, 0, 1, 1], [], []>} : vector<8x32xf32>, vector<32x128xf32>, vector<8x128xf32> -> vector<8x128xf32>
    %70 = arith.addf %68, %69 : vector<8x128xf32>
    %71 = arith.addf %70, %4 : vector<8x128xf32>
    %72 = arith.mulf %71, %13 : vector<8x128xf32>
    %73 = math.tanh %72 : vector<8x128xf32>
    %74 = arith.mulf %73, %13 : vector<8x128xf32>
    %75 = arith.addf %74, %16 : vector<8x128xf32>
    %76 = vector.extract_strided_slice %75 {offsets = [0, 0], sizes = [8, 32], strides = [1, 1]} : vector<8x128xf32> to vector<8x32xf32>
    %77 = vector.extract_strided_slice %75 {offsets = [0, 32], sizes = [8, 32], strides = [1, 1]} : vector<8x128xf32> to vector<8x32xf32>
    %78 = vector.extract_strided_slice %75 {offsets = [0, 64], sizes = [8, 32], strides = [1, 1]} : vector<8x128xf32> to vector<8x32xf32>
    %79 = vector.extract_strided_slice %75 {offsets = [0, 96], sizes = [8, 32], strides = [1, 1]} : vector<8x128xf32> to vector<8x32xf32>
    %80 = arith.mulf %77, %59 : vector<8x32xf32>
    %81 = arith.mulf %76, %78 : vector<8x32xf32>
    %82 = arith.addf %80, %81 : vector<8x32xf32>
    %83 = math.tanh %82 : vector<8x32xf32>
    %84 = arith.mulf %79, %83 : vector<8x32xf32>
    %c8_i32_25 = arith.constant 8 : i32
    %85 = arith.muli %c2_i32, %c8_i32_25 : i32
    %86 = arith.index_cast %85 : i32 to index
    %c0_26 = arith.constant 0 : index
    %87 = vector.load %arg8[%86, %c0_26] : memref<64x32xf32, #tpu.memory_space<vmem>>, vector<8x32xf32>
    tpu.vector_store %arg8[%86, %c0_26], %84 {strides = array<i32>} : memref<64x32xf32, #tpu.memory_space<vmem>>, vector<8x32xf32>,
    %c3_i32 = arith.constant 3 : i32
    %88 = arith.index_cast %c3_i32 : i32 to index
    %c0_27 = arith.constant 0 : index
    %c0_28 = arith.constant 0 : index
    %89 = vector.load %arg1[%88, %c0_27, %c0_28] : memref<8x8x16xf32, #tpu.memory_space<vmem>>, vector<1x8x16xf32>
    %90 = vector.shape_cast %89 : vector<1x8x16xf32> to vector<8x16xf32>
    %cst_29 = arith.constant dense<0.000000e+00> : vector<8x128xf32>
    %91 = tpu.matmul %90, %0, %cst_29 {dimension_numbers = #tpu.dot_dimension_numbers<[1], [0], [0], [1], [0, 0, 1, 1], [], []>} : vector<8x16xf32>, vector<16x128xf32>, vector<8x128xf32> -> vector<8x128xf32>
    %cst_30 = arith.constant dense<0.000000e+00> : vector<8x128xf32>
    %92 = tpu.matmul %84, %1, %cst_30 {dimension_numbers = #tpu.dot_dimension_numbers<[1], [0], [0], [1], [0, 0, 1, 1], [], []>} : vector<8x32xf32>, vector<32x128xf32>, vector<8x128xf32> -> vector<8x128xf32>
    %93 = arith.addf %91, %92 : vector<8x128xf32>
    %94 = arith.addf %93, %4 : vector<8x128xf32>
    %95 = arith.mulf %94, %13 : vector<8x128xf32>
    %96 = math.tanh %95 : vector<8x128xf32>
    %97 = arith.mulf %96, %13 : vector<8x128xf32>
    %98 = arith.addf %97, %16 : vector<8x128xf32>
    %99 = vector.extract_strided_slice %98 {offsets = [0, 0], sizes = [8, 32], strides = [1, 1]} : vector<8x128xf32> to vector<8x32xf32>
    %100 = vector.extract_strided_slice %98 {offsets = [0, 32], sizes = [8, 32], strides = [1, 1]} : vector<8x128xf32> to vector<8x32xf32>
    %101 = vector.extract_strided_slice %98 {offsets = [0, 64], sizes = [8, 32], strides = [1, 1]} : vector<8x128xf32> to vector<8x32xf32>
    %102 = vector.extract_strided_slice %98 {offsets = [0, 96], sizes = [8, 32], strides = [1, 1]} : vector<8x128xf32> to vector<8x32xf32>
    %103 = arith.mulf %100, %82 : vector<8x32xf32>
    %104 = arith.mulf %99, %101 : vector<8x32xf32>
    %105 = arith.addf %103, %104 : vector<8x32xf32>
    %106 = math.tanh %105 : vector<8x32xf32>
    %107 = arith.mulf %102, %106 : vector<8x32xf32>
    %c8_i32_31 = arith.constant 8 : i32
    %108 = arith.muli %c3_i32, %c8_i32_31 : i32
    %109 = arith.index_cast %108 : i32 to index
    %c0_32 = arith.constant 0 : index
    %110 = vector.load %arg8[%109, %c0_32] : memref<64x32xf32, #tpu.memory_space<vmem>>, vector<8x32xf32>
    tpu.vector_store %arg8[%109, %c0_32], %107 {strides = array<i32>} : memref<64x32xf32, #tpu.memory_space<vmem>>, vector<8x32xf32>,
    %c4_i32 = arith.constant 4 : i32
    %111 = arith.index_cast %c4_i32 : i32 to index
    %c0_33 = arith.constant 0 : index
    %c0_34 = arith.constant 0 : index
    %112 = vector.load %arg1[%111, %c0_33, %c0_34] : memref<8x8x16xf32, #tpu.memory_space<vmem>>, vector<1x8x16xf32>
    %113 = vector.shape_cast %112 : vector<1x8x16xf32> to vector<8x16xf32>
    %cst_35 = arith.constant dense<0.000000e+00> : vector<8x128xf32>
    %114 = tpu.matmul %113, %0, %cst_35 {dimension_numbers = #tpu.dot_dimension_numbers<[1], [0], [0], [1], [0, 0, 1, 1], [], []>} : vector<8x16xf32>, vector<16x128xf32>, vector<8x128xf32> -> vector<8x128xf32>
    %cst_36 = arith.constant dense<0.000000e+00> : vector<8x128xf32>
    %115 = tpu.matmul %107, %1, %cst_36 {dimension_numbers = #tpu.dot_dimension_numbers<[1], [0], [0], [1], [0, 0, 1, 1], [], []>} : vector<8x32xf32>, vector<32x128xf32>, vector<8x128xf32> -> vector<8x128xf32>
    %116 = arith.addf %114, %115 : vector<8x128xf32>
    %117 = arith.addf %116, %4 : vector<8x128xf32>
    %118 = arith.mulf %117, %13 : vector<8x128xf32>
    %119 = math.tanh %118 : vector<8x128xf32>
    %120 = arith.mulf %119, %13 : vector<8x128xf32>
    %121 = arith.addf %120, %16 : vector<8x128xf32>
    %122 = vector.extract_strided_slice %121 {offsets = [0, 0], sizes = [8, 32], strides = [1, 1]} : vector<8x128xf32> to vector<8x32xf32>
    %123 = vector.extract_strided_slice %121 {offsets = [0, 32], sizes = [8, 32], strides = [1, 1]} : vector<8x128xf32> to vector<8x32xf32>
    %124 = vector.extract_strided_slice %121 {offsets = [0, 64], sizes = [8, 32], strides = [1, 1]} : vector<8x128xf32> to vector<8x32xf32>
    %125 = vector.extract_strided_slice %121 {offsets = [0, 96], sizes = [8, 32], strides = [1, 1]} : vector<8x128xf32> to vector<8x32xf32>
    %126 = arith.mulf %123, %105 : vector<8x32xf32>
    %127 = arith.mulf %122, %124 : vector<8x32xf32>
    %128 = arith.addf %126, %127 : vector<8x32xf32>
    %129 = math.tanh %128 : vector<8x32xf32>
    %130 = arith.mulf %125, %129 : vector<8x32xf32>
    %c8_i32_37 = arith.constant 8 : i32
    %131 = arith.muli %c4_i32, %c8_i32_37 : i32
    %132 = arith.index_cast %131 : i32 to index
    %c0_38 = arith.constant 0 : index
    %133 = vector.load %arg8[%132, %c0_38] : memref<64x32xf32, #tpu.memory_space<vmem>>, vector<8x32xf32>
    tpu.vector_store %arg8[%132, %c0_38], %130 {strides = array<i32>} : memref<64x32xf32, #tpu.memory_space<vmem>>, vector<8x32xf32>,
    %c5_i32 = arith.constant 5 : i32
    %134 = arith.index_cast %c5_i32 : i32 to index
    %c0_39 = arith.constant 0 : index
    %c0_40 = arith.constant 0 : index
    %135 = vector.load %arg1[%134, %c0_39, %c0_40] : memref<8x8x16xf32, #tpu.memory_space<vmem>>, vector<1x8x16xf32>
    %136 = vector.shape_cast %135 : vector<1x8x16xf32> to vector<8x16xf32>
    %cst_41 = arith.constant dense<0.000000e+00> : vector<8x128xf32>
    %137 = tpu.matmul %136, %0, %cst_41 {dimension_numbers = #tpu.dot_dimension_numbers<[1], [0], [0], [1], [0, 0, 1, 1], [], []>} : vector<8x16xf32>, vector<16x128xf32>, vector<8x128xf32> -> vector<8x128xf32>
    %cst_42 = arith.constant dense<0.000000e+00> : vector<8x128xf32>
    %138 = tpu.matmul %130, %1, %cst_42 {dimension_numbers = #tpu.dot_dimension_numbers<[1], [0], [0], [1], [0, 0, 1, 1], [], []>} : vector<8x32xf32>, vector<32x128xf32>, vector<8x128xf32> -> vector<8x128xf32>
    %139 = arith.addf %137, %138 : vector<8x128xf32>
    %140 = arith.addf %139, %4 : vector<8x128xf32>
    %141 = arith.mulf %140, %13 : vector<8x128xf32>
    %142 = math.tanh %141 : vector<8x128xf32>
    %143 = arith.mulf %142, %13 : vector<8x128xf32>
    %144 = arith.addf %143, %16 : vector<8x128xf32>
    %145 = vector.extract_strided_slice %144 {offsets = [0, 0], sizes = [8, 32], strides = [1, 1]} : vector<8x128xf32> to vector<8x32xf32>
    %146 = vector.extract_strided_slice %144 {offsets = [0, 32], sizes = [8, 32], strides = [1, 1]} : vector<8x128xf32> to vector<8x32xf32>
    %147 = vector.extract_strided_slice %144 {offsets = [0, 64], sizes = [8, 32], strides = [1, 1]} : vector<8x128xf32> to vector<8x32xf32>
    %148 = vector.extract_strided_slice %144 {offsets = [0, 96], sizes = [8, 32], strides = [1, 1]} : vector<8x128xf32> to vector<8x32xf32>
    %149 = arith.mulf %146, %128 : vector<8x32xf32>
    %150 = arith.mulf %145, %147 : vector<8x32xf32>
    %151 = arith.addf %149, %150 : vector<8x32xf32>
    %152 = math.tanh %151 : vector<8x32xf32>
    %153 = arith.mulf %148, %152 : vector<8x32xf32>
    %c8_i32_43 = arith.constant 8 : i32
    %154 = arith.muli %c5_i32, %c8_i32_43 : i32
    %155 = arith.index_cast %154 : i32 to index
    %c0_44 = arith.constant 0 : index
    %156 = vector.load %arg8[%155, %c0_44] : memref<64x32xf32, #tpu.memory_space<vmem>>, vector<8x32xf32>
    tpu.vector_store %arg8[%155, %c0_44], %153 {strides = array<i32>} : memref<64x32xf32, #tpu.memory_space<vmem>>, vector<8x32xf32>,
    %c6_i32 = arith.constant 6 : i32
    %157 = arith.index_cast %c6_i32 : i32 to index
    %c0_45 = arith.constant 0 : index
    %c0_46 = arith.constant 0 : index
    %158 = vector.load %arg1[%157, %c0_45, %c0_46] : memref<8x8x16xf32, #tpu.memory_space<vmem>>, vector<1x8x16xf32>
    %159 = vector.shape_cast %158 : vector<1x8x16xf32> to vector<8x16xf32>
    %cst_47 = arith.constant dense<0.000000e+00> : vector<8x128xf32>
    %160 = tpu.matmul %159, %0, %cst_47 {dimension_numbers = #tpu.dot_dimension_numbers<[1], [0], [0], [1], [0, 0, 1, 1], [], []>} : vector<8x16xf32>, vector<16x128xf32>, vector<8x128xf32> -> vector<8x128xf32>
    %cst_48 = arith.constant dense<0.000000e+00> : vector<8x128xf32>
    %161 = tpu.matmul %153, %1, %cst_48 {dimension_numbers = #tpu.dot_dimension_numbers<[1], [0], [0], [1], [0, 0, 1, 1], [], []>} : vector<8x32xf32>, vector<32x128xf32>, vector<8x128xf32> -> vector<8x128xf32>
    %162 = arith.addf %160, %161 : vector<8x128xf32>
    %163 = arith.addf %162, %4 : vector<8x128xf32>
    %164 = arith.mulf %163, %13 : vector<8x128xf32>
    %165 = math.tanh %164 : vector<8x128xf32>
    %166 = arith.mulf %165, %13 : vector<8x128xf32>
    %167 = arith.addf %166, %16 : vector<8x128xf32>
    %168 = vector.extract_strided_slice %167 {offsets = [0, 0], sizes = [8, 32], strides = [1, 1]} : vector<8x128xf32> to vector<8x32xf32>
    %169 = vector.extract_strided_slice %167 {offsets = [0, 32], sizes = [8, 32], strides = [1, 1]} : vector<8x128xf32> to vector<8x32xf32>
    %170 = vector.extract_strided_slice %167 {offsets = [0, 64], sizes = [8, 32], strides = [1, 1]} : vector<8x128xf32> to vector<8x32xf32>
    %171 = vector.extract_strided_slice %167 {offsets = [0, 96], sizes = [8, 32], strides = [1, 1]} : vector<8x128xf32> to vector<8x32xf32>
    %172 = arith.mulf %169, %151 : vector<8x32xf32>
    %173 = arith.mulf %168, %170 : vector<8x32xf32>
    %174 = arith.addf %172, %173 : vector<8x32xf32>
    %175 = math.tanh %174 : vector<8x32xf32>
    %176 = arith.mulf %171, %175 : vector<8x32xf32>
    %c8_i32_49 = arith.constant 8 : i32
    %177 = arith.muli %c6_i32, %c8_i32_49 : i32
    %178 = arith.index_cast %177 : i32 to index
    %c0_50 = arith.constant 0 : index
    %179 = vector.load %arg8[%178, %c0_50] : memref<64x32xf32, #tpu.memory_space<vmem>>, vector<8x32xf32>
    tpu.vector_store %arg8[%178, %c0_50], %176 {strides = array<i32>} : memref<64x32xf32, #tpu.memory_space<vmem>>, vector<8x32xf32>,
    %c7_i32 = arith.constant 7 : i32
    %180 = arith.index_cast %c7_i32 : i32 to index
    %c0_51 = arith.constant 0 : index
    %c0_52 = arith.constant 0 : index
    %181 = vector.load %arg1[%180, %c0_51, %c0_52] : memref<8x8x16xf32, #tpu.memory_space<vmem>>, vector<1x8x16xf32>
    %182 = vector.shape_cast %181 : vector<1x8x16xf32> to vector<8x16xf32>
    %cst_53 = arith.constant dense<0.000000e+00> : vector<8x128xf32>
    %183 = tpu.matmul %182, %0, %cst_53 {dimension_numbers = #tpu.dot_dimension_numbers<[1], [0], [0], [1], [0, 0, 1, 1], [], []>} : vector<8x16xf32>, vector<16x128xf32>, vector<8x128xf32> -> vector<8x128xf32>
    %cst_54 = arith.constant dense<0.000000e+00> : vector<8x128xf32>
    %184 = tpu.matmul %176, %1, %cst_54 {dimension_numbers = #tpu.dot_dimension_numbers<[1], [0], [0], [1], [0, 0, 1, 1], [], []>} : vector<8x32xf32>, vector<32x128xf32>, vector<8x128xf32> -> vector<8x128xf32>
    %185 = arith.addf %183, %184 : vector<8x128xf32>
    %186 = arith.addf %185, %4 : vector<8x128xf32>
    %187 = arith.mulf %186, %13 : vector<8x128xf32>
    %188 = math.tanh %187 : vector<8x128xf32>
    %189 = arith.mulf %188, %13 : vector<8x128xf32>
    %190 = arith.addf %189, %16 : vector<8x128xf32>
    %191 = vector.extract_strided_slice %190 {offsets = [0, 0], sizes = [8, 32], strides = [1, 1]} : vector<8x128xf32> to vector<8x32xf32>
    %192 = vector.extract_strided_slice %190 {offsets = [0, 32], sizes = [8, 32], strides = [1, 1]} : vector<8x128xf32> to vector<8x32xf32>
    %193 = vector.extract_strided_slice %190 {offsets = [0, 64], sizes = [8, 32], strides = [1, 1]} : vector<8x128xf32> to vector<8x32xf32>
    %194 = vector.extract_strided_slice %190 {offsets = [0, 96], sizes = [8, 32], strides = [1, 1]} : vector<8x128xf32> to vector<8x32xf32>
    %195 = arith.mulf %192, %174 : vector<8x32xf32>
    %196 = arith.mulf %191, %193 : vector<8x32xf32>
    %197 = arith.addf %195, %196 : vector<8x32xf32>
    %198 = math.tanh %197 : vector<8x32xf32>
    %199 = arith.mulf %194, %198 : vector<8x32xf32>
    %c8_i32_55 = arith.constant 8 : i32
    %200 = arith.muli %c7_i32, %c8_i32_55 : i32
    %201 = arith.index_cast %200 : i32 to index
    %c0_56 = arith.constant 0 : index
    %202 = vector.load %arg8[%201, %c0_56] : memref<64x32xf32, #tpu.memory_space<vmem>>, vector<8x32xf32>
    tpu.vector_store %arg8[%201, %c0_56], %199 {strides = array<i32>} : memref<64x32xf32, #tpu.memory_space<vmem>>, vector<8x32xf32>,
    %c8_i32_57 = arith.constant 8 : i32
    %c0_58 = arith.constant 0 : index
    %c0_59 = arith.constant 0 : index
    %203 = vector.load %arg8[%c0_58, %c0_59] : memref<64x32xf32, #tpu.memory_space<vmem>>, vector<64x32xf32>
    %c0_60 = arith.constant 0 : index
    %c0_61 = arith.constant 0 : index
    %204 = vector.load %arg5[%c0_60, %c0_61] : memref<32x4xf32, #tpu.memory_space<vmem>>, vector<32x4xf32>
    %cst_62 = arith.constant dense<0.000000e+00> : vector<64x4xf32>
    %205 = tpu.matmul %203, %204, %cst_62 {dimension_numbers = #tpu.dot_dimension_numbers<[1], [0], [0], [1], [0, 0, 1, 1], [], []>} : vector<64x32xf32>, vector<32x4xf32>, vector<64x4xf32> -> vector<64x4xf32>
    %c0_63 = arith.constant 0 : index
    %c0_64 = arith.constant 0 : index
    %206 = vector.load %arg6[%c0_63, %c0_64] : memref<1x4xf32, #tpu.memory_space<vmem>>, vector<1x4xf32>
    %207 = vector.broadcast %206 : vector<1x4xf32> to vector<64x4xf32>
    %208 = arith.addf %205, %207 : vector<64x4xf32>
    %c0_65 = arith.constant 0 : index
    %c0_66 = arith.constant 0 : index
    %209 = vector.load %arg7[%c0_65, %c0_66] : memref<64x4xf32, #tpu.memory_space<vmem>>, vector<64x4xf32>
    tpu.vector_store %arg7[%c0_65, %c0_66], %208 {strides = array<i32>} : memref<64x4xf32, #tpu.memory_space<vmem>>, vector<64x4xf32>,
    return
  }
  func.func @transform_0(%arg0: i32) -> (i32, i32, i32) {
    %c0_i32 = arith.constant 0 : i32
    %c0_i32_0 = arith.constant 0 : i32
    %c0_i32_1 = arith.constant 0 : i32
    %c0_i32_2 = arith.constant 0 : i32
    return %c0_i32, %c0_i32_0, %c0_i32_1 : i32, i32, i32
  }
  func.func @transform_1(%arg0: i32) -> (i32, i32) {
    %c0_i32 = arith.constant 0 : i32
    %c0_i32_0 = arith.constant 0 : i32
    %c0_i32_1 = arith.constant 0 : i32
    return %c0_i32, %c0_i32_0 : i32, i32
  }
  func.func @transform_2(%arg0: i32) -> (i32, i32) {
    %c0_i32 = arith.constant 0 : i32
    %c0_i32_0 = arith.constant 0 : i32
    %c0_i32_1 = arith.constant 0 : i32
    return %c0_i32, %c0_i32_0 : i32, i32
  }
  func.func @transform_3(%arg0: i32) -> (i32, i32) {
    %c0_i32 = arith.constant 0 : i32
    %c0_i32_0 = arith.constant 0 : i32
    %c0_i32_1 = arith.constant 0 : i32
    return %c0_i32, %c0_i32_0 : i32, i32
  }
  func.func @transform_4(%arg0: i32) -> (i32, i32) {
    %c0_i32 = arith.constant 0 : i32
    %c0_i32_0 = arith.constant 0 : i32
    %c0_i32_1 = arith.constant 0 : i32
    return %c0_i32, %c0_i32_0 : i32, i32
  }
  func.func @transform_5(%arg0: i32) -> (i32, i32) {
    %c0_i32 = arith.constant 0 : i32
    %c0_i32_0 = arith.constant 0 : i32
    %c0_i32_1 = arith.constant 0 : i32
    return %c0_i32, %c0_i32_0 : i32, i32
  }
  func.func @transform_6(%arg0: i32) -> (i32, i32) {
    %c0_i32 = arith.constant 0 : i32
    %c0_i32_0 = arith.constant 0 : i32
    %c0_i32_1 = arith.constant 0 : i32
    return %c0_i32, %c0_i32_0 : i32, i32
  }
}

</mosaic_0001>

<bundles_post_ra>
// kernel: tpu_custom_call.1
= control target key start
LH: loop header
LB: loop body
LE: loop exit
PB: predicated region body
PF: predicated region fallthrough
CT: control target
= control target key end

     0   :  { %11 = vsyncpa [#allocation4], 0  ;;  %s2396_s0 = inlined_call_operand.hbm [shape: f32[8,8,16], index: 0, kind: input, shape index: {}]   ;;  %s2397_s1 = inlined_call_operand.hbm [shape: f32[16,128], index: 1, kind: input, shape index: {}]   ;;  %s2398_s2 = inlined_call_operand.vmem [shape: f32[32,128], index: 2, kind: input, shape index: {}]   ;;  %s2399_s3 = inlined_call_operand.vmem [shape: f32[1,128], index: 3, kind: input, shape index: {}]   ;;  %s2400_s4 = inlined_call_operand.vmem [shape: f32[32,4], index: 4, kind: input, shape index: {}]   ;;  %s2401_s5 = inlined_call_operand.vmem [shape: f32[1,4], index: 5, kind: input, shape index: {}]   ;;  %s2402_s6 = inlined_call_operand.vmem [shape: f32[64,4], index: 6, kind: output, shape index: {}]  }
   0x1   :  { %12 = vsyncpa [#allocation6], 0  ;;  %s2063_s21 = smov [#allocation3]   ;;  %s2015_s25 = scalar_lea.hbm %s2396_s0, 1024 }
   0x2   :  { %s18_s22 = sshll.u32 %s2063_s21, 4  ;;  %p2016_p0 = scmp.ne.s32.totalorder %s2396_s0, %s2015_s25  ;;  %s19_s22 = int_to_ptr.vmem [resolvable:$true] %s18_s22 }
   0x3   :  { %p2019_p1 = scmp.lt.u32.totalorder %s2015_s25, %s2396_s0 }
   0x5   :  { %p2021_p2 = pnand %p2019_p1, %p2016_p0 }
   0x7   :  { %2024 = shalt.err (!%p2021_p2)
}
   0x8   :  { %s2025_s30 = scalar_lea.vmem %s19_s22, 1024  ;;  %p2030_p4 = scmp.lt.s32.totalorder %s19_s22, %s19_s22 }
   0x9   :  { %p2026_p3 = scmp.ne.s32.totalorder %s19_s22, %s2025_s30  ;;  %p2031_p5 = scmp.lt.s32.totalorder %s2025_s30, %s2025_s30 }
   0xb   :  { %p2032_p6 = por %p2031_p5, %p2030_p4 }
   0xd   :  { %p2033_p7 = pnand %p2032_p6, %p2026_p3 }
   0xf   :  { %2036 = shalt.err (!%p2033_p7)
}
  0x10   :  { %s2064_s7 = smov 128   ;;  %s2065_s8 = smov 8  }
  0x11   :  { %24 = dma.hbm_to_vmem [thread:$0]  %s2396_s0, 1024, %s19_s22, [#allocation4], %s2064_s7, %s2064_s7, %s2065_s8  }
  0x12   :  { %s2066_s11 = smov [#allocation5]   ;;  %s2037_s15 = scalar_lea.hbm %s2397_s1, 256 }
  0x13   :  { %s30_s12 = sshll.u32 %s2066_s11, 4  ;;  %p2038_p8 = scmp.ne.s32.totalorder %s2397_s1, %s2037_s15  ;;  %s31_s12 = int_to_ptr.vmem [resolvable:$true] %s30_s12 }
  0x14   :  { %p2041_p9 = scmp.lt.u32.totalorder %s2037_s15, %s2397_s1 }
  0x16   :  { %p2043_p10 = pnand %p2041_p9, %p2038_p8 }
  0x18   :  { %2046 = shalt.err (!%p2043_p10)
}
  0x19   :  { %s2047_s20 = scalar_lea.vmem %s31_s12, 256  ;;  %p2052_p12 = scmp.lt.s32.totalorder %s31_s12, %s31_s12 }
  0x1a   :  { %p2048_p11 = scmp.ne.s32.totalorder %s31_s12, %s2047_s20  ;;  %p2053_p13 = scmp.lt.s32.totalorder %s2047_s20, %s2047_s20 }
  0x1c   :  { %p2054_p0 = por %p2053_p13, %p2052_p12 }
  0x1e   :  { %p2055_p1 = pnand %p2054_p0, %p2048_p11 }
  0x20   :  { %2058 = shalt.err (!%p2055_p1)
}
  0x21   :  { %36 = dma.hbm_to_vmem [thread:$0]  %s2397_s1, 256, %s31_s12, [#allocation6], %s2064_s7, %s2064_s7, %s2065_s8  }
  0x22   :  { %2059 = dma.done.wait [#allocation4], 1024  }
  0x23   :  { %2060 = vsyncadd [#allocation4], 4294966272 }
  0x24   :  { %2061 = dma.done.wait [#allocation6], 256  }
  0x25   :  { %2062 = vsyncadd [#allocation6], 4294967040  ;;  %v2067_v0 = vmov 0.0|0.0   ;;  %vm2068_vm0 = vmmov 0   ;;  %v2069_v1 = vmov 0.0   ;;  %v53_v2 = vld [vmem:[%s2398_s2] sm:$0xff]  ;;  %v64_v12 = vlaneseq }
  0x26   :  { %1893 = vmatprep.subr.bf16.mxu1 %v2067_v0  ;;  %1737 = vmatprep.mubr.msk.f32.mxu1 %vm2068_vm0, %v2069_v1  ;;  %v54_v3 = vld [vmem:[%s2398_s2 + $0x8] sm:$0xff]  ;;  %v55_v4 = vld [vmem:[%s2398_s2 + $0x10] sm:$0xff]  ;;  %v56_v6 = vld [vmem:[%s2398_s2 + $0x18] sm:$0xff]  ;;  %vm146_vm1 = vcmask 130048   ;;  %v2070_v20 = vmov 0.5   ;;  %s2072_s30 = smov 32  }
  0x27   :  { %1908 = vmatprep.subr.bf16.mxu0 %v2067_v0  ;;  %1762 = vmatprep.mubr.msk.f32.mxu0 %vm2068_vm0, %v2069_v1  ;;  %v2147_v5 = vpack.c.bf16 %v54_v3, %v53_v2  ;;  %v51_v7 = vld [vmem:[#allocation5] sm:$0xff]  ;;  %v52_v8 = vld [vmem:[#allocation5 + $0x8] sm:$0xff]  ;;  %v2155_v10 = vpack.c.bf16 %v56_v6, %v55_v4  ;;  %v65_v13 = vand.u32 127, %v64_v12  ;;  %vm72_vm5 = vcmask 261120   ;;  %v422_v54 = vld [vmem:[#allocation3 + $0x10] sm:$0xff] }
  0x28   :  { %v2152_v9 = vpack.c.bf16 %v52_v8, %v51_v7  ;;  %v71_v11 = vld [vmem:[#allocation3] sm:$0xff]  ;;  %v248_v34 = vld [vmem:[#allocation3 + $0x8] sm:$0xff]  ;;  %vm1613_vm6 = vcmask 31744  }
  0x29   :  { %1895 = vmatpush3.bf16.msra.mxu1 %v2147_v5  ;;  %vm66_vm2 = vcmp.ge.s32.totalorder %v65_v13, 64  ;;  %vm67_vm3 = vcmp.lt.s32.totalorder %v65_v13, 96  ;;  %v2177_v16 = vld [vmem:[%s2399_s3] ss:$0 sm:$0xff]  ;;  %s2071_s3 = smov 64  }
  0x2a   :  { %1896 = vmatprep.subr.bf16.mxu1 %v2067_v0  ;;  %1910 = vmatpush3.bf16.msra.mxu0 %v2152_v9  ;;  %vm68_vm4 = vmand %vm66_vm2, %vm67_vm3 }
  0x2b   :  { %1911 = vmatprep.subr.bf16.mxu0 %v2067_v0  ;;  %v2179_v21 = vsel %vm68_vm4, 1.0, %v2070_v20  ;;  %v2183_v25 = vsel %vm68_vm4, 0.0, %v2070_v20 }
  0x2d   :  { %1898 = vmatpush3.bf16.msra.mxu1 %v2155_v10  ;;  %1763 = vmatmul.mubr.msk.f32.vlgmr.msra.gmra.mrb[0].mxu0 %vm146_vm1, %v248_v34 }
  0x2e   :  { %1899 = vmatprep.subr.bf16.mxu1 %v2067_v0  ;;  %1913 = vmatpush3.bf16.msra.mxu0 %v2147_v5 }
  0x2f   :  { %1773 = vmatprep.mubr.msk.f32.mxu0 %vm2068_vm0, %v2069_v1  ;;  %1914 = vmatprep.subr.bf16.mxu0 %v2067_v0 }
  0x30   :  { %1738 = vmatmul.mubr.f32.vlgmr.msra.gmra.mrb[0].mxu1 %v2069_v1 }
  0x31   :  { %1901 = vmatpush3.bf16.msra.mxu1 %v2152_v9  ;;  %1744 = vmatprep.mubr.msk.f32.mxu1 %vm2068_vm0, %v2069_v1 }
  0x32   :  { %1902 = vmatprep.subr.bf16.mxu1 %v2067_v0  ;;  %1916 = vmatpush3.bf16.msra.mxu0 %v2155_v10 }
  0x33   :  { %1926 = vmatprep.subr.bf16.mxu0 %v2067_v0 }
  0x34   :  { %1745 = vmatmul.mubr.msk.f32.vlgmr.msra.gmra.mrb[2].mxu1 %vm146_vm1, %v71_v11 }
  0x35   :  { %1904 = vmatpush3.bf16.msra.mxu1 %v2147_v5  ;;  %1755 = vmatprep.mubr.msk.f32.mxu1 %vm2068_vm0, %v2069_v1 }
  0x36   :  { %1905 = vmatprep.subr.bf16.mxu1 %v2067_v0 }
  0x39   :  { %1907 = vmatpush3.bf16.msra.mxu1 %v2155_v10 }
  0x3a   :  { %1917 = vmatprep.subr.bf16.mxu1 %v2067_v0 }
 0x100   :  { %v390_v38 = vpop.f32.mrb[0].mxu0 }
 0x101   :  { %v1764_v39 = vpop.f32.mrb[1].mxu0 }
 0x103   :  { %v142_v14 = vpop.f32.mrb[0].mxu1 }
 0x104   :  { %v1739_v15 = vpop.f32.mrb[1].mxu1 }
 0x105   :  { %v596_v15 = vld [vmem:[#allocation3 + $0x18] sm:$0xff] }
 0x107   :  { %v216_v17 = vpop.f32.mrb[2].mxu1 }
 0x108   :  { %v217_v18 = vadd.f32 %v216_v17, %v142_v14  ;;  %v1746_v19 = vpop.f32.mrb[3].mxu1 }
 0x10a   :  { %v220_v22 = vadd.f32 %v2177_v16, %v217_v18 }
 0x10c   :  { %v221_v23 = vmul.f32 %v220_v22, %v2179_v21 }
 0x10e   :  { %1983 = vtanh.f32 %v221_v23 }
 0x118   :  { %v1984_v24 = vpop.eup %1983 }
 0x119   :  { %v223_v26 = vmul.f32 %v1984_v24, %v2179_v21 }
 0x11b   :  { %v224_v27 = vadd.f32 %v223_v26, %v2183_v25 }
 0x11d   :  { %227 = vrot.lane.b32.xlu0 %v224_v27, %s2071_s3  ;;  %v225_v30 = vmul.f32 0.0, %v224_v27 }
 0x18f   :  { %v228_v28 = vpop.permute.xlu0 %227 }
 0x190   :  { %v230_v29 = vmul.f32 %v228_v28, %v224_v27 }
 0x192   :  { %232 = vrot.lane.b32.xlu0 %v230_v29, %s2072_s30 }
 0x204   :  { %v233_v31 = vpop.permute.xlu0 %232 }
 0x205   :  { %v235_v32 = vadd.f32 %v233_v31, %v225_v30 }
 0x207   :  { %1985 = vtanh.f32 %v235_v32 }
 0x211   :  { %v1986_v33 = vpop.eup %1985 }
 0x212   :  { %238 = vrot.lane.b32.xlu1 %v1986_v33, %s2071_s3 }
 0x284   :  { %v239_v35 = vpop.permute.xlu1 %238 }
 0x285   :  { %v241_v36 = vmul.f32 %v239_v35, %v224_v27 }
 0x287   :  { %243 = vrot.lane.b32.xlu1 %v241_v36, %s2072_s30 }
 0x2f9   :  { %v244_v37 = vpop.permute.xlu1 %243 }
 0x2fa   :  { %246 = vst.msk [vmem:[#allocation2] sm:$0xff] %vm72_vm5, %v244_v37  ;;  %1756 = vmatmul.mubr.msk.f32.vlgmr.msra.gmra.mrb[4].mxu1 %vm72_vm5, %v244_v37 }
 0x2fb   :  { %1919 = vmatpush3.bf16.msra.mxu1 %v2152_v9  ;;  %1780 = vmatprep.mubr.msk.f32.mxu1 %vm2068_vm0, %v2069_v1 }
 0x2fc   :  { %1920 = vmatprep.subr.bf16.mxu1 %v2067_v0 }
 0x2fe   :  { %1781 = vmatmul.mubr.msk.f32.vlgmr.msra.gmra.mrb[6].mxu1 %vm146_vm1, %v422_v54 }
 0x2ff   :  { %1922 = vmatpush3.bf16.msra.mxu1 %v2147_v5  ;;  %1791 = vmatprep.mubr.msk.f32.mxu1 %vm2068_vm0, %v2069_v1 }
 0x300   :  { %1923 = vmatprep.subr.bf16.mxu1 %v2067_v0 }
 0x303   :  { %1925 = vmatpush3.bf16.msra.mxu1 %v2155_v10 }
 0x304   :  { %1935 = vmatprep.subr.bf16.mxu1 %v2067_v0 }
 0x3cd   :  { %v317_v40 = vpop.f32.mrb[4].mxu1 }
 0x3ce   :  { %v391_v41 = vadd.f32 %v390_v38, %v317_v40  ;;  %v1757_v42 = vpop.f32.mrb[5].mxu1  ;;  %v770_v38 = vld [vmem:[#allocation3 + $0x20] sm:$0xff] }
 0x3d0   :  { %v394_v43 = vadd.f32 %v2177_v16, %v391_v41 }
 0x3d1   :  { %v564_v58 = vpop.f32.mrb[6].mxu1 }
 0x3d2   :  { %v395_v44 = vmul.f32 %v394_v43, %v2179_v21  ;;  %v1782_v59 = vpop.f32.mrb[7].mxu1 }
 0x3d4   :  { %1987 = vtanh.f32 %v395_v44 }
 0x3de   :  { %v1988_v45 = vpop.eup %1987 }
 0x3df   :  { %v397_v46 = vmul.f32 %v1988_v45, %v2179_v21 }
 0x3e1   :  { %v398_v47 = vadd.f32 %v397_v46, %v2183_v25 }
 0x3e3   :  { %401 = vrot.lane.b32.xlu0 %v398_v47, %s2071_s3  ;;  %v399_v50 = vmul.f32 %v398_v47, %v235_v32 }
 0x455   :  { %v402_v48 = vpop.permute.xlu0 %401 }
 0x456   :  { %v404_v49 = vmul.f32 %v402_v48, %v398_v47 }
 0x458   :  { %406 = vrot.lane.b32.xlu1 %v404_v49, %s2072_s30 }
 0x4ca   :  { %v407_v51 = vpop.permute.xlu1 %406 }
 0x4cb   :  { %v409_v52 = vadd.f32 %v407_v51, %v399_v50 }
 0x4cd   :  { %1989 = vtanh.f32 %v409_v52 }
 0x4d7   :  { %v1990_v53 = vpop.eup %1989 }
 0x4d8   :  { %412 = vrot.lane.b32.xlu0 %v1990_v53, %s2071_s3 }
 0x54a   :  { %v413_v55 = vpop.permute.xlu0 %412 }
 0x54b   :  { %v415_v56 = vmul.f32 %v413_v55, %v398_v47 }
 0x54d   :  { %417 = vrot.lane.b32.xlu1 %v415_v56, %s2072_s30 }
 0x5bf   :  { %v418_v57 = vpop.permute.xlu1 %417 }
 0x5c0   :  { %420 = vst.msk [vmem:[#allocation2 + $0x8] sm:$0xff] %vm72_vm5, %v418_v57  ;;  %1774 = vmatmul.mubr.msk.f32.vlgmr.msra.gmra.mrb[2].mxu0 %vm72_vm5, %v418_v57 }
 0x5c1   :  { %1928 = vmatpush3.bf16.msra.mxu0 %v2152_v9  ;;  %1798 = vmatprep.mubr.msk.f32.mxu0 %vm2068_vm0, %v2069_v1 }
 0x5c2   :  { %1929 = vmatprep.subr.bf16.mxu0 %v2067_v0 }
 0x5c4   :  { %1799 = vmatmul.mubr.msk.f32.vlgmr.msra.gmra.mrb[4].mxu0 %vm146_vm1, %v596_v15 }
 0x5c5   :  { %1931 = vmatpush3.bf16.msra.mxu0 %v2147_v5  ;;  %1809 = vmatprep.mubr.msk.f32.mxu0 %vm2068_vm0, %v2069_v1 }
 0x5c6   :  { %1932 = vmatprep.subr.bf16.mxu0 %v2067_v0 }
 0x5c9   :  { %1934 = vmatpush3.bf16.msra.mxu0 %v2155_v10 }
 0x5ca   :  { %1944 = vmatprep.subr.bf16.mxu0 %v2067_v0 }
 0x693   :  { %v491_v60 = vpop.f32.mrb[2].mxu0 }
 0x694   :  { %v565_v61 = vadd.f32 %v564_v58, %v491_v60  ;;  %v1775_v62 = vpop.f32.mrb[3].mxu0  ;;  %v944_v58 = vld [vmem:[#allocation3 + $0x28] sm:$0xff] }
 0x696   :  { %v568_v63 = vadd.f32 %v2177_v16, %v565_v61 }
 0x697   :  { %v738_v20 = vpop.f32.mrb[4].mxu0 }
 0x698   :  { %v569_v2 = vmul.f32 %v568_v63, %v2179_v21  ;;  %v1800_v22 = vpop.f32.mrb[5].mxu0 }
 0x69a   :  { %1991 = vtanh.f32 %v569_v2 }
 0x6a4   :  { %v1992_v3 = vpop.eup %1991 }
 0x6a5   :  { %v571_v4 = vmul.f32 %v1992_v3, %v2179_v21 }
 0x6a7   :  { %v572_v6 = vadd.f32 %v571_v4, %v2183_v25 }
 0x6a9   :  { %575 = vrot.lane.b32.xlu0 %v572_v6, %s2071_s3  ;;  %v573_v11 = vmul.f32 %v572_v6, %v409_v52 }
 0x71b   :  { %v576_v7 = vpop.permute.xlu0 %575 }
 0x71c   :  { %v578_v8 = vmul.f32 %v576_v7, %v572_v6 }
 0x71e   :  { %580 = vrot.lane.b32.xlu1 %v578_v8, %s2072_s30 }
 0x790   :  { %v581_v12 = vpop.permute.xlu1 %580 }
 0x791   :  { %v583_v13 = vadd.f32 %v581_v12, %v573_v11 }
 0x793   :  { %1993 = vtanh.f32 %v583_v13 }
 0x79d   :  { %v1994_v14 = vpop.eup %1993 }
 0x79e   :  { %586 = vrot.lane.b32.xlu0 %v1994_v14, %s2071_s3 }
 0x810   :  { %v587_v17 = vpop.permute.xlu0 %586 }
 0x811   :  { %v589_v18 = vmul.f32 %v587_v17, %v572_v6 }
 0x813   :  { %591 = vrot.lane.b32.xlu1 %v589_v18, %s2072_s30 }
 0x885   :  { %v592_v19 = vpop.permute.xlu1 %591 }
 0x886   :  { %594 = vst.msk [vmem:[#allocation2 + $0x10] sm:$0xff] %vm72_vm5, %v592_v19  ;;  %1792 = vmatmul.mubr.msk.f32.vlgmr.msra.gmra.mrb[8].mxu1 %vm72_vm5, %v592_v19 }
 0x887   :  { %1937 = vmatpush3.bf16.msra.mxu1 %v2152_v9  ;;  %1816 = vmatprep.mubr.msk.f32.mxu1 %vm2068_vm0, %v2069_v1 }
 0x888   :  { %1938 = vmatprep.subr.bf16.mxu1 %v2067_v0 }
 0x88a   :  { %1817 = vmatmul.mubr.msk.f32.vlgmr.msra.gmra.mrb[10].mxu1 %vm146_vm1, %v770_v38 }
 0x88b   :  { %1940 = vmatpush3.bf16.msra.mxu1 %v2147_v5  ;;  %1827 = vmatprep.mubr.msk.f32.mxu1 %vm2068_vm0, %v2069_v1 }
 0x88c   :  { %1941 = vmatprep.subr.bf16.mxu1 %v2067_v0 }
 0x88f   :  { %1943 = vmatpush3.bf16.msra.mxu1 %v2155_v10 }
 0x890   :  { %1953 = vmatprep.subr.bf16.mxu1 %v2067_v0 }
 0x959   :  { %v665_v23 = vpop.f32.mrb[8].mxu1 }
 0x95a   :  { %v739_v24 = vadd.f32 %v738_v20, %v665_v23  ;;  %v1793_v26 = vpop.f32.mrb[9].mxu1  ;;  %v1118_v20 = vld [vmem:[#allocation3 + $0x30] sm:$0xff] }
 0x95b   :  { %v1474_v26 = vld [vmem:[%s2400_s4 + $0x8] sm:$0xff] }
 0x95c   :  { %v742_v27 = vadd.f32 %v2177_v16, %v739_v24  ;;  %v1473_v24 = vld [vmem:[%s2400_s4] sm:$0xff] }
 0x95d   :  { %v912_v42 = vpop.f32.mrb[10].mxu1 }
 0x95e   :  { %v743_v28 = vmul.f32 %v742_v27, %v2179_v21  ;;  %v1818_v43 = vpop.f32.mrb[11].mxu1 }
 0x95f   :  { %v2334_v43 = vld [vmem:[%s2401_s5] ss:$0 sm:$0xff] }
 0x960   :  { %1995 = vtanh.f32 %v743_v28  ;;  %v1292_v28 = vld [vmem:[#allocation3 + $0x38] sm:$0xff] }
 0x96a   :  { %v1996_v29 = vpop.eup %1995 }
 0x96b   :  { %v745_v30 = vmul.f32 %v1996_v29, %v2179_v21 }
 0x96d   :  { %v746_v31 = vadd.f32 %v745_v30, %v2183_v25  ;;  %v1465_v30 = vld [vmem:[#allocation2] sm:$0xff] }
 0x96f   :  { %749 = vrot.lane.b32.xlu0 %v746_v31, %s2071_s3  ;;  %v747_v34 = vmul.f32 %v746_v31, %v583_v13 }
 0x9e1   :  { %v750_v32 = vpop.permute.xlu0 %749 }
 0x9e2   :  { %v752_v33 = vmul.f32 %v750_v32, %v746_v31  ;;  %v1467_v32 = vld [vmem:[#allocation2 + $0x10] sm:$0xff] }
 0x9e4   :  { %754 = vrot.lane.b32.xlu1 %v752_v33, %s2072_s30 }
 0xa56   :  { %v755_v35 = vpop.permute.xlu1 %754 }
 0xa57   :  { %v757_v36 = vadd.f32 %v755_v35, %v747_v34 }
 0xa59   :  { %1997 = vtanh.f32 %v757_v36 }
 0xa63   :  { %v1998_v37 = vpop.eup %1997 }
 0xa64   :  { %760 = vrot.lane.b32.xlu0 %v1998_v37, %s2071_s3 }
 0xad6   :  { %v761_v39 = vpop.permute.xlu0 %760 }
 0xad7   :  { %v763_v40 = vmul.f32 %v761_v39, %v746_v31  ;;  %v1466_v31 = vld [vmem:[#allocation2 + $0x8] sm:$0xff] }
 0xad9   :  { %765 = vrot.lane.b32.xlu1 %v763_v40, %s2072_s30 }
 0xb4b   :  { %v766_v41 = vpop.permute.xlu1 %765 }
 0xb4c   :  { %768 = vst.msk [vmem:[#allocation2 + $0x18] sm:$0xff] %vm72_vm5, %v766_v41  ;;  %1810 = vmatmul.mubr.msk.f32.vlgmr.msra.gmra.mrb[6].mxu0 %vm72_vm5, %v766_v41 }
 0xb4d   :  { %1946 = vmatpush3.bf16.msra.mxu0 %v2152_v9  ;;  %1834 = vmatprep.mubr.msk.f32.mxu0 %vm2068_vm0, %v2069_v1 }
 0xb4e   :  { %1947 = vmatprep.subr.bf16.mxu0 %v2067_v0 }
 0xb50   :  { %1835 = vmatmul.mubr.msk.f32.vlgmr.msra.gmra.mrb[8].mxu0 %vm146_vm1, %v944_v58 }
 0xb51   :  { %1949 = vmatpush3.bf16.msra.mxu0 %v2147_v5  ;;  %1845 = vmatprep.mubr.msk.f32.mxu0 %vm2068_vm0, %v2069_v1 }
 0xb52   :  { %1950 = vmatprep.subr.bf16.mxu0 %v2067_v0 }
 0xb55   :  { %1952 = vmatpush3.bf16.msra.mxu0 %v2155_v10 }
 0xb56   :  { %1962 = vmatprep.subr.bf16.mxu0 %v2067_v0 }
 0xc1f   :  { %v839_v44 = vpop.f32.mrb[6].mxu0 }
 0xc20   :  { %v913_v45 = vadd.f32 %v912_v42, %v839_v44  ;;  %v1811_v46 = vpop.f32.mrb[7].mxu0 }
 0xc22   :  { %v916_v47 = vadd.f32 %v2177_v16, %v913_v45 }
 0xc23   :  { %v1086_v62 = vpop.f32.mrb[8].mxu0 }
 0xc24   :  { %v917_v48 = vmul.f32 %v916_v47, %v2179_v21  ;;  %v1836_v63 = vpop.f32.mrb[9].mxu0 }
 0xc26   :  { %1999 = vtanh.f32 %v917_v48 }
 0xc30   :  { %v2000_v49 = vpop.eup %1999 }
 0xc31   :  { %v919_v50 = vmul.f32 %v2000_v49, %v2179_v21 }
 0xc33   :  { %v920_v51 = vadd.f32 %v919_v50, %v2183_v25 }
 0xc35   :  { %923 = vrot.lane.b32.xlu0 %v920_v51, %s2071_s3  ;;  %v921_v54 = vmul.f32 %v920_v51, %v757_v36 }
 0xca7   :  { %v924_v52 = vpop.permute.xlu0 %923 }
 0xca8   :  { %v926_v53 = vmul.f32 %v924_v52, %v920_v51 }
 0xcaa   :  { %928 = vrot.lane.b32.xlu1 %v926_v53, %s2072_s30 }
 0xd1c   :  { %v929_v55 = vpop.permute.xlu1 %928 }
 0xd1d   :  { %v931_v56 = vadd.f32 %v929_v55, %v921_v54 }
 0xd1f   :  { %2001 = vtanh.f32 %v931_v56 }
 0xd29   :  { %v2002_v57 = vpop.eup %2001 }
 0xd2a   :  { %934 = vrot.lane.b32.xlu0 %v2002_v57, %s2071_s3 }
 0xd9c   :  { %v935_v59 = vpop.permute.xlu0 %934 }
 0xd9d   :  { %v937_v60 = vmul.f32 %v935_v59, %v920_v51 }
 0xd9f   :  { %939 = vrot.lane.b32.xlu1 %v937_v60, %s2072_s30 }
 0xe11   :  { %v940_v61 = vpop.permute.xlu1 %939 }
 0xe12   :  { %942 = vst.msk [vmem:[#allocation2 + $0x20] sm:$0xff] %vm72_vm5, %v940_v61  ;;  %1828 = vmatmul.mubr.msk.f32.vlgmr.msra.gmra.mrb[12].mxu1 %vm72_vm5, %v940_v61 }
 0xe13   :  { %1955 = vmatpush3.bf16.msra.mxu1 %v2152_v9  ;;  %1852 = vmatprep.mubr.msk.f32.mxu1 %vm2068_vm0, %v2069_v1 }
 0xe14   :  { %1956 = vmatprep.subr.bf16.mxu1 %v2067_v0 }
 0xe16   :  { %1853 = vmatmul.mubr.msk.f32.vlgmr.msra.gmra.mrb[14].mxu1 %vm146_vm1, %v1118_v20 }
 0xe17   :  { %1958 = vmatpush3.bf16.msra.mxu1 %v2147_v5  ;;  %1863 = vmatprep.mubr.msk.f32.mxu1 %vm2068_vm0, %v2069_v1  ;;  %v1965_v5 = vpack.c.bf16 %v1474_v26, %v1473_v24 }
 0xe18   :  { %1959 = vmatprep.subr.bf16.mxu1 %v2067_v0  ;;  %v1475_v0 = vld [vmem:[%s2400_s4 + $0x10] sm:$0xff] }
 0xe1b   :  { %1961 = vmatpush3.bf16.msra.mxu1 %v2155_v10  ;;  %v1476_v10 = vld [vmem:[%s2400_s4 + $0x18] sm:$0xff] }
 0xe1c   :  { %v1969_v29 = vpack.c.bf16 %v1476_v10, %v1475_v0 }
 0xee5   :  { %v1013_v2 = vpop.f32.mrb[12].mxu1 }
 0xee6   :  { %v1087_v3 = vadd.f32 %v1086_v62, %v1013_v2  ;;  %v1829_v4 = vpop.f32.mrb[13].mxu1 }
 0xee8   :  { %v1090_v6 = vadd.f32 %v2177_v16, %v1087_v3 }
 0xee9   :  { %v1260_v34 = vpop.f32.mrb[14].mxu1 }
 0xeea   :  { %v1091_v7 = vmul.f32 %v1090_v6, %v2179_v21  ;;  %v1854_v35 = vpop.f32.mrb[15].mxu1 }
 0xeec   :  { %2003 = vtanh.f32 %v1091_v7 }
 0xef6   :  { %v2004_v8 = vpop.eup %2003 }
 0xef7   :  { %v1093_v11 = vmul.f32 %v2004_v8, %v2179_v21 }
 0xef9   :  { %v1094_v12 = vadd.f32 %v1093_v11, %v2183_v25 }
 0xefb   :  { %1097 = vrot.lane.b32.xlu0 %v1094_v12, %s2071_s3  ;;  %v1095_v15 = vmul.f32 %v1094_v12, %v931_v56 }
 0xf6d   :  { %v1098_v13 = vpop.permute.xlu0 %1097 }
 0xf6e   :  { %v1100_v14 = vmul.f32 %v1098_v13, %v1094_v12 }
 0xf70   :  { %1102 = vrot.lane.b32.xlu1 %v1100_v14, %s2072_s30 }
 0xfe2   :  { %v1103_v17 = vpop.permute.xlu1 %1102 }
 0xfe3   :  { %v2294_v18 = vadd.f32 %v1103_v17, %v1095_v15 }
 0xfe5   :  { %2005 = vtanh.f32 %v2294_v18 }
 0xfef   :  { %v2006_v19 = vpop.eup %2005 }
 0xff0   :  { %1108 = vrot.lane.b32.xlu0 %v2006_v19, %s2071_s3 }
0x1062   :  { %v1109_v22 = vpop.permute.xlu0 %1108 }
0x1063   :  { %v1111_v23 = vmul.f32 %v1109_v22, %v1094_v12 }
0x1065   :  { %1113 = vrot.lane.b32.xlu1 %v1111_v23, %s2072_s30 }
0x10d7   :  { %v1114_v27 = vpop.permute.xlu1 %1113 }
0x10d8   :  { %1116 = vst.msk [vmem:[#allocation2 + $0x28] sm:$0xff] %vm72_vm5, %v1114_v27  ;;  %1846 = vmatmul.mubr.msk.f32.vlgmr.msra.gmra.mrb[10].mxu0 %vm72_vm5, %v1114_v27 }
0x10d9   :  { %1964 = vmatpush3.bf16.msra.mxu0 %v2152_v9  ;;  %1870 = vmatprep.mubr.msk.f32.mxu0 %vm2068_vm0, %v2069_v1  ;;  %v1468_v9 = vld [vmem:[#allocation2 + $0x18] sm:$0xff]  ;;  %v1469_v1 = vld [vmem:[#allocation2 + $0x20] sm:$0xff] }
0x10da   :  { %1966 = vmatprep.subr.bf16.mxu0 %v1965_v5 }
0x10dc   :  { %1871 = vmatmul.mubr.msk.f32.vlgmr.msra.gmra.mrb[12].mxu0 %vm146_vm1, %v1292_v28 }
0x10dd   :  { %1968 = vmatpush3.bf16.msra.mxu0 %v1965_v5  ;;  %1881 = vmatprep.mubr.msk.f32.mxu0 %vm72_vm5, %v1465_v30 }
0x10de   :  { %1970 = vmatprep.subr.bf16.mxu0 %v1969_v29 }
0x10df   :  { %v1470_v33 = vld [vmem:[#allocation2 + $0x28] sm:$0xff] }
0x10e1   :  { %1972 = vmatpush3.bf16.msra.mxu0 %v1969_v29 }
0x10e4   :  { %1882 = vmatmul.mubr.msk.f32.vlgmr.msra.gmra.mrb[14].mxu0 %vm72_vm5, %v1466_v31 }
0x10e5   :  { %1884 = vmatprep.mubr.msk.f32.mxu0 %vm72_vm5, %v1467_v32 }
0x10e8   :  { %1885 = vmatmul.mubr.msk.f32.gmra.mrb[16].mxu0 %vm72_vm5, %v1468_v9 }
0x10e9   :  { %1887 = vmatprep.mubr.msk.f32.mxu0 %vm72_vm5, %v1469_v1 }
0x10ec   :  { %1888 = vmatmul.mubr.msk.f32.gmra.mrb[18].mxu0 %vm72_vm5, %v1470_v33 }
0x11ab   :  { %v1187_v36 = vpop.f32.mrb[10].mxu0 }
0x11ac   :  { %v1261_v37 = vadd.f32 %v1260_v34, %v1187_v36  ;;  %v1847_v38 = vpop.f32.mrb[11].mxu0 }
0x11ae   :  { %v1264_v39 = vadd.f32 %v2177_v16, %v1261_v37 }
0x11af   :  { %v1434_v40 = vpop.f32.mrb[12].mxu0 }
0x11b0   :  { %v1265_v41 = vmul.f32 %v1264_v39, %v2179_v21  ;;  %v1872_v42 = vpop.f32.mrb[13].mxu0 }
0x11b2   :  { %2007 = vtanh.f32 %v1265_v41 }
0x11b7   :  { %v1883_v44 = vpop.f32.mrb[14].mxu0 }
0x11b8   :  { %v1580_v45 = vadd.f32 %v1883_v44, %v2334_v43  ;;  %v1574_v46 = vpop.f32.mrb[15].mxu0 }
0x11b9   :  { %v1575_v47 = vadd.f32 %v2334_v43, %v1574_v46 }
0x11ba   :  { %1615 = vst.msk [vmem:[%s2402_s6 + $0x8] sm:$0xff] %vm1613_vm6, %v1580_v45 }
0x11bb   :  { %1614 = vst.msk [vmem:[%s2402_s6] sm:$0xff] %vm1613_vm6, %v1575_v47  ;;  %v1886_v48 = vpop.f32.mrb[16].mxu0 }
0x11bc   :  { %v2008_v49 = vpop.eup %2007  ;;  %v1590_v50 = vadd.f32 %v1886_v48, %v2334_v43  ;;  %v1584_v51 = vpop.f32.mrb[17].mxu0 }
0x11bd   :  { %v1585_v52 = vadd.f32 %v2334_v43, %v1584_v51  ;;  %v1267_v53 = vmul.f32 %v2008_v49, %v2179_v21 }
0x11be   :  { %1617 = vst.msk [vmem:[%s2402_s6 + $0x18] sm:$0xff] %vm1613_vm6, %v1590_v50 }
0x11bf   :  { %1616 = vst.msk [vmem:[%s2402_s6 + $0x10] sm:$0xff] %vm1613_vm6, %v1585_v52  ;;  %v1889_v54 = vpop.f32.mrb[18].mxu0  ;;  %v1268_v55 = vadd.f32 %v1267_v53, %v2183_v25 }
0x11c0   :  { %v1600_v56 = vadd.f32 %v1889_v54, %v2334_v43  ;;  %v1594_v57 = vpop.f32.mrb[19].mxu0 }
0x11c1   :  { %v1595_v58 = vadd.f32 %v2334_v43, %v1594_v57  ;;  %1271 = vrot.lane.b32.xlu0 %v1268_v55, %s2071_s3  ;;  %v1269_v61 = vmul.f32 %v1268_v55, %v2294_v18 }
0x11c2   :  { %1619 = vst.msk [vmem:[%s2402_s6 + $0x28] sm:$0xff] %vm1613_vm6, %v1600_v56 }
0x11c3   :  { %1618 = vst.msk [vmem:[%s2402_s6 + $0x20] sm:$0xff] %vm1613_vm6, %v1595_v58 }
0x1233   :  { %v1272_v59 = vpop.permute.xlu0 %1271 }
0x1234   :  { %v1274_v60 = vmul.f32 %v1272_v59, %v1268_v55 }
0x1236   :  { %1276 = vrot.lane.b32.xlu1 %v1274_v60, %s2072_s30 }
0x12a8   :  { %v1277_v62 = vpop.permute.xlu1 %1276 }
0x12a9   :  { %v1279_v63 = vadd.f32 %v1277_v62, %v1269_v61 }
0x12ab   :  { %2009 = vtanh.f32 %v1279_v63 }
0x12b5   :  { %v2010_v2 = vpop.eup %2009 }
0x12b6   :  { %1282 = vrot.lane.b32.xlu0 %v2010_v2, %s2071_s3 }
0x1328   :  { %v1283_v3 = vpop.permute.xlu0 %1282 }
0x1329   :  { %v1285_v4 = vmul.f32 %v1283_v3, %v1268_v55 }
0x132b   :  { %1287 = vrot.lane.b32.xlu1 %v1285_v4, %s2072_s30 }
0x139d   :  { %v1288_v6 = vpop.permute.xlu1 %1287 }
0x139e   :  { %1290 = vst.msk [vmem:[#allocation2 + $0x30] sm:$0xff] %vm72_vm5, %v1288_v6  ;;  %1864 = vmatmul.mubr.msk.f32.vlgmr.msra.gmra.mrb[16].mxu1 %vm72_vm5, %v1288_v6 }
0x13a5   :  { %v1471_v7 = vld [vmem:[#allocation2 + $0x30] sm:$0xff] }
0x13a6   :  { %1890 = vmatprep.mubr.msk.f32.mxu0 %vm72_vm5, %v1471_v7 }
0x1471   :  { %v1361_v8 = vpop.f32.mrb[16].mxu1 }
0x1472   :  { %v1435_v11 = vadd.f32 %v1434_v40, %v1361_v8  ;;  %v1865_v12 = vpop.f32.mrb[17].mxu1 }
0x1474   :  { %v1438_v13 = vadd.f32 %v2177_v16, %v1435_v11 }
0x1476   :  { %v1439_v14 = vmul.f32 %v1438_v13, %v2179_v21 }
0x1478   :  { %2011 = vtanh.f32 %v1439_v14 }
0x1482   :  { %v2012_v15 = vpop.eup %2011 }
0x1483   :  { %v1441_v17 = vmul.f32 %v2012_v15, %v2179_v21 }
0x1485   :  { %v1442_v18 = vadd.f32 %v1441_v17, %v2183_v25 }
0x1487   :  { %1445 = vrot.lane.b32.xlu0 %v1442_v18, %s2071_s3  ;;  %v1443_v22 = vmul.f32 %v1442_v18, %v1279_v63 }
0x14f9   :  { %v1446_v19 = vpop.permute.xlu0 %1445 }
0x14fa   :  { %v1448_v20 = vmul.f32 %v1446_v19, %v1442_v18 }
0x14fc   :  { %1450 = vrot.lane.b32.xlu1 %v1448_v20, %s2072_s30 }
0x156e   :  { %v1451_v23 = vpop.permute.xlu1 %1450 }
0x156f   :  { %v1453_v24 = vadd.f32 %v1451_v23, %v1443_v22 }
0x1571   :  { %2013 = vtanh.f32 %v1453_v24 }
0x157b   :  { %v2014_v26 = vpop.eup %2013 }
0x157c   :  { %1456 = vrot.lane.b32.xlu0 %v2014_v26, %s2071_s3 }
0x15ee   :  { %v1457_v16 = vpop.permute.xlu0 %1456 }
0x15ef   :  { %v1459_v5 = vmul.f32 %v1457_v16, %v1442_v18 }
0x15f1   :  { %1461 = vrot.lane.b32.xlu1 %v1459_v5, %s2072_s30 }
0x1663   :  { %v1462_v21 = vpop.permute.xlu1 %1461 }
0x1664   :  { %1464 = vst.msk [vmem:[#allocation2 + $0x38] sm:$0xff] %vm72_vm5, %v1462_v21 }
0x166b   :  { %v1472_v25 = vld [vmem:[#allocation2 + $0x38] sm:$0xff] }
0x166c   :  { %1891 = vmatmul.mubr.msk.f32.gmra.mrb[20].mxu0 %vm72_vm5, %v1472_v25 }
0x173f   :  { %v1892_v27 = vpop.f32.mrb[20].mxu0 }
0x1740   :  { %v1610_v0 = vadd.f32 %v1892_v27, %v2334_v43  ;;  %v1604_v10 = vpop.f32.mrb[21].mxu0 }
0x1741   :  { %v1605_v28 = vadd.f32 %v2334_v43, %v1604_v10 }
0x1742   :  { %1621 = vst.msk [vmem:[%s2402_s6 + $0x38] sm:$0xff] %vm1613_vm6, %v1610_v0 }
0x1743   :  { %1620 = vst.msk [vmem:[%s2402_s6 + $0x30] sm:$0xff] %vm1613_vm6, %v1605_v28 }
0x1744   :  { %1626 = vsyncpa [#allocation4], 1 }
0x1745   :  { %1627 = vsyncpa [#allocation6], 1 }

</bundles_post_ra>
